<compile_context>
chip_gen: v5e
topology: v5e:2x2
jax: 0.10.0
libtpu: 0.0.40
codegen_flags: <defaults>
</compile_context>

<pallas_src>
import jax
import jax.numpy as jnp
from jax.experimental import pallas as pl
from jax.experimental.pallas import tpu as pltpu


def _round_up(x, m):
    return (x + m - 1) // m * m


# --------------------------------------------------------------------------
# Kernel 1 (run once per call): fold Linear + ReLU into the embedding table.
#   table2[v, :] = relu(emb[v, :] @ W + b)
# --------------------------------------------------------------------------
def _fuse_table_kernel(emb_ref, w_ref, b_ref, tbl_ref):
    y = jnp.dot(emb_ref[...], w_ref[...], preferred_element_type=jnp.float32)
    y = y + b_ref[...]
    tbl_ref[...] = jnp.maximum(y, 0.0).astype(tbl_ref.dtype)


# --------------------------------------------------------------------------
# Kernel 2 (hot path): batched row gather from table2 via one-hot MXU matmul.
#   out[i, :] = table2[idx[i], :]
# --------------------------------------------------------------------------
def _onehot_gather_kernel(idx_ref, tbl_ref, out_ref):
    tb = out_ref.shape[0]
    v_pad = tbl_ref.shape[0]
    ids = idx_ref[...]                                          # [TB, 1] int32
    lane = jax.lax.broadcasted_iota(jnp.int32, (tb, v_pad), 1)  # vocab on lanes
    onehot = (lane == ids).astype(jnp.float32)                  # [TB, V_pad]
    out_ref[...] = jnp.dot(
        onehot, tbl_ref[...], preferred_element_type=jnp.float32
    ).astype(out_ref.dtype)


def element_encoder(element, emb_table, weight_t, bias,
                    *, batch_tile=256, table_tile=512):
    """relu(linear(embedding(element))) -- Pallas TPU implementation.

    element   : int array of any shape (indices into the embedding table)
    emb_table : [V, D_in] float32
    weight_t  : [D_in, D_out] float32   (transpose of PyTorch Linear weight)
    bias      : [D_out] float32
    returns   : element.shape + (D_out,) float32
    """
    orig_shape = element.shape
    V, D_in = emb_table.shape
    D_out = weight_t.shape[1]

    # ---- pad to TPU-friendly shapes (lane-dense output, aligned tiles) ----
    N_pad = _round_up(D_out, 128)                  # lanes: unmasked stores
    if V <= table_tile:
        V_pad = _round_up(V, 8)
        tv = V_pad
    else:
        V_pad = _round_up(V, table_tile)
        tv = table_tile

    emb_p = jnp.pad(emb_table.astype(jnp.float32), ((0, V_pad - V), (0, 0)))
    w_p = jnp.pad(weight_t.astype(jnp.float32), ((0, 0), (0, N_pad - D_out)))
    b_p = jnp.pad(bias.astype(jnp.float32), (0, N_pad - D_out)).reshape(1, N_pad)

    # ---- kernel 1: table2 = relu(emb @ W + b), tiled over vocab rows ----
    table2 = pl.pallas_call(
        _fuse_table_kernel,
        out_shape=jax.ShapeDtypeStruct((V_pad, N_pad), jnp.float32),
        grid=(V_pad // tv,),
        in_specs=[
            pl.BlockSpec((tv, D_in), lambda i: (i, 0)),
            pl.BlockSpec((D_in, N_pad), lambda i: (0, 0)),   # constant -> fetched once
            pl.BlockSpec((1, N_pad), lambda i: (0, 0)),
        ],
        out_specs=pl.BlockSpec((tv, N_pad), lambda i: (i, 0)),
        compiler_params=pltpu.CompilerParams(
            dimension_semantics=("parallel",)),
    )(emb_p, w_p, b_p)

    # ---- kernel 2: one-hot gather, tiled over the (flattened) batch ----
    idx = jnp.clip(element.reshape(-1).astype(jnp.int32), 0, V - 1)
    B = idx.shape[0]
    if B <= batch_tile:
        Bp = _round_up(B, 8)
        tb = Bp
    else:
        Bp = _round_up(B, batch_tile)
        tb = batch_tile
    idx_p = jnp.pad(idx, (0, Bp - B)).reshape(Bp, 1)  # padded rows gather row 0

    out = pl.pallas_call(
        _onehot_gather_kernel,
        out_shape=jax.ShapeDtypeStruct((Bp, N_pad), jnp.float32),
        grid=(Bp // tb,),
        in_specs=[
            pl.BlockSpec((tb, 1), lambda i: (i, 0)),
            pl.BlockSpec((V_pad, N_pad), lambda i: (0, 0)),  # constant -> fetched once
        ],
        out_specs=pl.BlockSpec((tb, N_pad), lambda i: (i, 0)),
        compiler_params=pltpu.CompilerParams(
            dimension_semantics=("parallel",)),
    )(idx_p, table2)

    return out[:B, :D_out].reshape(orig_shape + (D_out,))


if __name__ == "__main__":
    key = jax.random.PRNGKey(0)
    k_idx, k_emb, k_w, k_b = jax.random.split(key, 4)

    # Small shapes consistent with the module:
    #   vocab=50, embedding_dim = linear_input_dim = 32, linear_output_dim = 32
    #   element indices of shape [batch=2, num_elements=4]
    vocab, d_in, d_out = 50, 32, 32
    element = jax.random.randint(k_idx, (2, 4), 0, vocab, dtype=jnp.int32)

    # Deterministic synthetic parameters (module __init__ shapes).
    emb_table = jax.random.normal(k_emb, (vocab, d_in), dtype=jnp.float32)
    weight_t = 0.1 * jax.random.normal(k_w, (d_in, d_out), dtype=jnp.float32)  # [in, out]
    bias = 0.1 * jax.random.normal(k_b, (d_out,), dtype=jnp.float32)

    out = element_encoder(element, emb_table, weight_t, bias)
    out = jax.block_until_ready(out)

    # Pure-JAX reference of the PyTorch forward.
    ref = jnp.maximum(emb_table[element] @ weight_t + bias, 0.0)
    assert out.shape == element.shape + (d_out,)
    assert jnp.allclose(out, ref, atol=1e-4, rtol=1e-4)

    print("KERNEL_OK")
</pallas_src>

<mosaic_0001>
module attributes {stable_mosaic.version = 11 : i64} {
  func.func @_fuse_table_kernel(%arg0: i32, %arg1: memref<56x32xf32, #tpu.memory_space<vmem>>, %arg2: memref<32x128xf32, #tpu.memory_space<vmem>>, %arg3: memref<1x128xf32, #tpu.memory_space<vmem>>, %arg4: memref<56x128xf32, #tpu.memory_space<vmem>>) attributes {dimension_semantics = [#tpu.dimension_semantics<parallel>], iteration_bounds = array<i64: 1>, scalar_prefetch = 0 : i64, scratch_operands = 0 : i64, tpu.core_type = #tpu.core_type<tc>, window_params = [{transform_indices = @transform_0, window_bounds = array<i64: 56, 32>}, {pipeline_mode = #tpu.pipeline_mode<synchronous>, transform_indices = @transform_1, window_bounds = array<i64: 32, 128>}, {pipeline_mode = #tpu.pipeline_mode<synchronous>, transform_indices = @transform_2, window_bounds = array<i64: 1, 128>}, {transform_indices = @transform_3, window_bounds = array<i64: 56, 128>}]} {
    %c0 = arith.constant 0 : index
    %c0_0 = arith.constant 0 : index
    %0 = vector.load %arg1[%c0, %c0_0] : memref<56x32xf32, #tpu.memory_space<vmem>>, vector<56x32xf32>
    %c0_1 = arith.constant 0 : index
    %c0_2 = arith.constant 0 : index
    %1 = vector.load %arg2[%c0_1, %c0_2] : memref<32x128xf32, #tpu.memory_space<vmem>>, vector<32x128xf32>
    %cst = arith.constant dense<0.000000e+00> : vector<56x128xf32>
    %2 = tpu.matmul %0, %1, %cst {dimension_numbers = #tpu.dot_dimension_numbers<[1], [0], [0], [1], [0, 0, 1, 1], [], []>} : vector<56x32xf32>, vector<32x128xf32>, vector<56x128xf32> -> vector<56x128xf32>
    %c0_3 = arith.constant 0 : index
    %c0_4 = arith.constant 0 : index
    %3 = vector.load %arg3[%c0_3, %c0_4] : memref<1x128xf32, #tpu.memory_space<vmem>>, vector<1x128xf32>
    %4 = vector.broadcast %3 : vector<1x128xf32> to vector<56x128xf32>
    %5 = arith.addf %2, %4 : vector<56x128xf32>
    %cst_5 = arith.constant 0.000000e+00 : f32
    %6 = vector.broadcast %cst_5 : f32 to vector<56x128xf32>
    %7 = arith.maximumf %5, %6 : vector<56x128xf32>
    %c0_6 = arith.constant 0 : index
    %c0_7 = arith.constant 0 : index
    %8 = vector.load %arg4[%c0_6, %c0_7] : memref<56x128xf32, #tpu.memory_space<vmem>>, vector<56x128xf32>
    tpu.vector_store %arg4[%c0_6, %c0_7], %7 {strides = array<i32>} : memref<56x128xf32, #tpu.memory_space<vmem>>, vector<56x128xf32>,
    return
  }
  func.func @transform_0(%arg0: i32) -> (i32, i32) {
    %c0_i32 = arith.constant 0 : i32
    %c0_i32_0 = arith.constant 0 : i32
    return %arg0, %c0_i32 : i32, i32
  }
  func.func @transform_1(%arg0: i32) -> (i32, i32) {
    %c0_i32 = arith.constant 0 : i32
    %c0_i32_0 = arith.constant 0 : i32
    %c0_i32_1 = arith.constant 0 : i32
    return %c0_i32, %c0_i32_0 : i32, i32
  }
  func.func @transform_2(%arg0: i32) -> (i32, i32) {
    %c0_i32 = arith.constant 0 : i32
    %c0_i32_0 = arith.constant 0 : i32
    %c0_i32_1 = arith.constant 0 : i32
    return %c0_i32, %c0_i32_0 : i32, i32
  }
  func.func @transform_3(%arg0: i32) -> (i32, i32) {
    %c0_i32 = arith.constant 0 : i32
    %c0_i32_0 = arith.constant 0 : i32
    return %arg0, %c0_i32 : i32, i32
  }
}

</mosaic_0001>

<bundles_post_ra>
// kernel: tpu_custom_call.1
= control target key start
LH: loop header
LB: loop body
LE: loop exit
PB: predicated region body
PF: predicated region fallthrough
CT: control target
= control target key end

     0   :  { %s240_s0 = inlined_call_operand.vmem [shape: f32[56,32], index: 0, kind: input, shape index: {}]   ;;  %s241_s1 = inlined_call_operand.vmem [shape: f32[32,128], index: 1, kind: input, shape index: {}]   ;;  %s242_s2 = inlined_call_operand.vmem [shape: f32[1,128], index: 2, kind: input, shape index: {}]   ;;  %s243_s3 = inlined_call_operand.hbm [shape: f32[56,128], index: 3, kind: output, shape index: {}]  }
   0x1   :  { %v25_v0 = vld [vmem:[%s241_s1 + $0x18] sm:$0xff]  ;;  %v24_v1 = vld [vmem:[%s241_s1 + $0x10] sm:$0xff]  ;;  %v23_v2 = vld [vmem:[%s241_s1 + $0x8] sm:$0xff] }
   0x2   :  { %131 = vmatpush.msra.mxu3 %v25_v0  ;;  %64 = vmatpush.msra.mxu0 %v25_v0  ;;  %v22_v3 = vld [vmem:[%s241_s1] sm:$0xff] }
   0x3   :  { %129 = vmatpush.msra.mxu1 %v25_v0  ;;  %130 = vmatpush.msra.mxu2 %v25_v0 }
   0x4   :  { %134 = vmatpush.msra.mxu3 %v24_v1  ;;  %65 = vmatpush.msra.mxu0 %v24_v1 }
   0x5   :  { %132 = vmatpush.msra.mxu1 %v24_v1  ;;  %133 = vmatpush.msra.mxu2 %v24_v1 }
   0x6   :  { %8 = vsyncpa [#allocation3], 0  ;;  %137 = vmatpush.msra.mxu3 %v23_v2  ;;  %v20_v4 = vld [vmem:[%s240_s0 + $0x28] sm:$0xff]  ;;  %vm30_vm0 = vcmask 261120   ;;  %66 = vmatpush.msra.mxu0 %v23_v2  ;;  %v15_v5 = vld [vmem:[%s240_s0] sm:$0xff]  ;;  %s110_s10 = sshll.u32 %s243_s3, 4  ;;  %s111_s10 = int_to_ptr.hbm [resolvable:$true] %s110_s10 }
   0x7   :  { %135 = vmatpush.msra.mxu1 %v23_v2  ;;  %136 = vmatpush.msra.mxu2 %v23_v2  ;;  %v17_v6 = vld [vmem:[%s240_s0 + $0x10] sm:$0xff]  ;;  %v19_v7 = vld [vmem:[%s240_s0 + $0x20] sm:$0xff]  ;;  %v16_v9 = vld [vmem:[%s240_s0 + $0x8] sm:$0xff]  ;;  %s172_s11 = smov 128   ;;  %s173_s12 = smov 8  }
   0x8   :  { %140 = vmatpush.msra.mxu3 %v22_v3  ;;  %67 = vmatpush.msra.mxu0 %v22_v3  ;;  %v21_v8 = vld [vmem:[%s240_s0 + $0x30] sm:$0xff]  ;;  %v18_v10 = vld [vmem:[%s240_s0 + $0x18] sm:$0xff]  ;;  %v144_v11 = vld [vmem:[%s242_s2] ss:$0 sm:$0xff]  ;;  %s171_s0 = smov [#allocation2]  }
   0x9   :  { %127 = vmatmul.msk.f32.vlgmr.msra.gmra.mxu3 %vm30_vm0, %v20_v4  ;;  %138 = vmatpush.msra.mxu1 %v22_v3  ;;  %s108_s2 = sshll.u32 %s171_s0, 4  ;;  %s109_s2 = int_to_ptr.vmem [resolvable:$true] %s108_s2 }
   0xa   :  { %122 = vmatmul.msk.f32.vlgmr.msra.gmra.mxu0 %vm30_vm0, %v15_v5  ;;  %124 = vmatmul.msk.f32.vlgmr.msra.gmra.mxu1 %vm30_vm0, %v17_v6 }
   0xb   :  { %139 = vmatpush.msra.mxu2 %v22_v3 }
   0xc   :  { %126 = vmatmul.msk.f32.vlgmr.msra.gmra.mxu2 %vm30_vm0, %v19_v7 }
  0x11   :  { %128 = vmatmul.msk.f32.gmra.mxu3 %vm30_vm0, %v21_v8 }
  0x12   :  { %123 = vmatmul.msk.f32.gmra.mxu0 %vm30_vm0, %v16_v9  ;;  %125 = vmatmul.msk.f32.gmra.mxu1 %vm30_vm0, %v18_v10 }
  0x87   :  { %v69_v12 = vpop.f32.mrf.mxu0  ;;  %v75_v13 = vpop.f32.mrf.mxu1 }
  0x88   :  { %v70_v14 = vadd.f32 %v144_v11, %v69_v12  ;;  %v76_v15 = vadd.f32 %v144_v11, %v75_v13 }
  0x8a   :  { %v90_v16 = vmax.f32 %v70_v14, 0.0  ;;  %v92_v17 = vmax.f32 %v76_v15, 0.0 }
  0x8c   :  { %97 = vst [vmem:[#allocation2] sm:$0xff] %v90_v16  ;;  %v84_v18 = vpop.f32.mrf.mxu3 }
  0x8d   :  { %99 = vst [vmem:[#allocation2 + $0x10] sm:$0xff] %v92_v17  ;;  %v85_v19 = vadd.f32 %v144_v11, %v84_v18 }
  0x8f   :  { %v95_v20 = vmax.f32 %v85_v19, 0.0  ;;  %v72_v21 = vpop.f32.mrf.mxu0  ;;  %v78_v22 = vpop.f32.mrf.mxu1 }
  0x90   :  { %v73_v23 = vadd.f32 %v144_v11, %v72_v21  ;;  %v79_v24 = vadd.f32 %v144_v11, %v78_v22  ;;  %v81_v25 = vpop.f32.mrf.mxu2 }
  0x91   :  { %102 = vst [vmem:[#allocation2 + $0x28] sm:$0xff] %v95_v20  ;;  %v82_v26 = vadd.f32 %v144_v11, %v81_v25 }
  0x92   :  { %v91_v27 = vmax.f32 %v73_v23, 0.0  ;;  %v93_v28 = vmax.f32 %v79_v24, 0.0 }
  0x93   :  { %v94_v29 = vmax.f32 %v82_v26, 0.0 }
  0x94   :  { %98 = vst [vmem:[#allocation2 + $0x8] sm:$0xff] %v91_v27  ;;  %v87_v30 = vpop.f32.mrf.mxu3 }
  0x95   :  { %100 = vst [vmem:[#allocation2 + $0x18] sm:$0xff] %v93_v28  ;;  %v88_v31 = vadd.f32 %v144_v11, %v87_v30 }
  0x96   :  { %101 = vst [vmem:[#allocation2 + $0x20] sm:$0xff] %v94_v29 }
  0x97   :  { %v96_v32 = vmax.f32 %v88_v31, 0.0 }
  0x99   :  { %103 = vst [vmem:[#allocation2 + $0x30] sm:$0xff] %v96_v32 }
  0x9a   :  { %116 = dma.vmem_to_hbm [thread:$0]  %s109_s2, 896, %s111_s10, [#allocation3], %s172_s11, %s172_s11, %s173_s12  }
  0x9b   :  { %169 = dma.done.wait [#allocation3], 896  }
  0x9c   :  { %170 = vsyncadd [#allocation3], 4294966400 }
  0x9d   :  { %121 = vsyncpa [#allocation3], 1 }

</bundles_post_ra>
